<compile_context>
chip_gen: v7x
topology: tpu7x:2x2x1
jax: 0.10.0
libtpu: 0.0.40
codegen_flags: <defaults>
</compile_context>

<pallas_src>
import math

import jax
import jax.numpy as jnp
from jax.experimental import pallas as pl
from jax.experimental.pallas import tpu as pltpu

_EPS = 1e-5
_HALF_LOG_2PI = 0.5 * math.log(2.0 * math.pi)
_FPAD = 128   # lane-dense padded feature width

# Row indices inside the packed (16, 128) parameter slab.
_G1, _B1, _G2, _B2, _G3, _B3, _G4, _B4 = range(8)
_C1, _C2, _C3, _C4 = 8, 9, 10, 11
_STD, _LPB, _PRELU = 12, 13, 14


def _batch_norm(x, gamma, beta):
    # nn.BatchNorm1d (training mode): batch stats, biased variance, eps=1e-5.
    mean = jnp.mean(x, axis=0, keepdims=True)
    var = jnp.mean((x - mean) * (x - mean), axis=0, keepdims=True)
    return (x - mean) * jax.lax.rsqrt(var + _EPS) * gamma + beta


def _prelu(x, a):
    # nn.PReLU with one shared weight (broadcast row).
    return jnp.where(x > 0, x, a * x)


def ppo_actor_kernel(s_ref, noise_ref, w_ref, p_ref, out_ref):
    a = p_ref[_PRELU:_PRELU + 1, :]                            # (1, 128)

    x = s_ref[...]                                             # (B, 128), zero-padded lanes
    x = _batch_norm(x, p_ref[_G1:_G1 + 1, :], p_ref[_B1:_B1 + 1, :])
    x = _prelu(jnp.dot(x, w_ref[0], preferred_element_type=jnp.float32)
               + p_ref[_C1:_C1 + 1, :], a)
    x = _batch_norm(x, p_ref[_G2:_G2 + 1, :], p_ref[_B2:_B2 + 1, :])
    x = _prelu(jnp.dot(x, w_ref[1], preferred_element_type=jnp.float32)
               + p_ref[_C2:_C2 + 1, :], a)
    x = _batch_norm(x, p_ref[_G3:_G3 + 1, :], p_ref[_B3:_B3 + 1, :])
    x = _prelu(jnp.dot(x, w_ref[2], preferred_element_type=jnp.float32)
               + p_ref[_C3:_C3 + 1, :], a)
    x = _batch_norm(x, p_ref[_G4:_G4 + 1, :], p_ref[_B4:_B4 + 1, :])
    action_mean = jnp.tanh(jnp.dot(x, w_ref[3], preferred_element_type=jnp.float32)
                           + p_ref[_C4:_C4 + 1, :])            # (B, 128)

    std = p_ref[_STD:_STD + 1, :]                              # clipped std, 0 on padded lanes
    noise = noise_ref[...]                                     # (B, 128), 0 on padded lanes
    resampled = action_mean + std * noise                      # mean + std * eps (Normal.sample)

    # Normal.log_prob(resampled) with z == noise:
    #   -0.5*noise^2 - log(std) - 0.5*log(2*pi)
    # The per-lane bias -(log(std) + 0.5*log(2*pi)) is precomputed in the
    # wrapper and is 0 on padded lanes, so padded lanes contribute exactly 0.
    lp = -0.5 * noise * noise + p_ref[_LPB:_LPB + 1, :]
    log_prob = jnp.sum(lp, axis=-1, keepdims=True)             # (B, 1)

    # Single lane-dense output slab.
    out_ref[0] = action_mean
    out_ref[1] = resampled
    out_ref[2] = jnp.broadcast_to(log_prob, action_mean.shape)


def _pad_lanes(v):
    return jnp.pad(v, ((0, 0), (0, _FPAD - v.shape[-1])))


def _pad_weight(w):
    return jnp.pad(w, ((0, _FPAD - w.shape[0]), (0, _FPAD - w.shape[1])))


def _ppo_actor_forward(params, s, noise, std_scale):
    """Returns (log_prob (B,1), action_mean (B,A), resampled_action (B,A), entropy (1,1))."""
    B = s.shape[0]
    A = params["std"].shape[1]

    # ---- parameter-only math hoisted out of the kernel ----------------------
    std = jnp.clip(params["std"], 0.05 * std_scale, 0.5 * std_scale)     # hardtanh
    log_std = jnp.log(std)
    entropy = jnp.mean(0.5 + _HALF_LOG_2PI + log_std).reshape(1, 1)      # dist.entropy().mean()

    # ---- pack parameters into two aligned slabs ------------------------------
    rows = [
        _pad_lanes(params["g1"]), _pad_lanes(params["b1"]),
        _pad_lanes(params["g2"]), _pad_lanes(params["b2"]),
        _pad_lanes(params["g3"]), _pad_lanes(params["b3"]),
        _pad_lanes(params["g4"]), _pad_lanes(params["b4"]),
        _pad_lanes(params["c1"]), _pad_lanes(params["c2"]),
        _pad_lanes(params["c3"]), _pad_lanes(params["c4"]),
        _pad_lanes(std),
        _pad_lanes(-(log_std + _HALF_LOG_2PI)),
        jnp.broadcast_to(params["prelu"], (1, _FPAD)),
        jnp.zeros((1, _FPAD), jnp.float32),
    ]
    p_packed = jnp.concatenate(rows, axis=0)                             # (16, 128)
    w_packed = jnp.stack([_pad_weight(params["w1"]), _pad_weight(params["w2"]),
                          _pad_weight(params["w3"]), _pad_weight(params["w4"])])  # (4,128,128)

    s_pad = _pad_lanes(s)                                                # (B, 128)
    noise_pad = _pad_lanes(noise)                                        # (B, 128)

    vmem = pl.BlockSpec(memory_space=pltpu.MemorySpace.VMEM)
    out = pl.pallas_call(
        ppo_actor_kernel,
        out_shape=jax.ShapeDtypeStruct((3, B, _FPAD), jnp.float32),
        in_specs=[vmem, vmem, vmem, vmem],
        out_specs=vmem,
    )(s_pad, noise_pad, w_packed, p_packed)

    action_mean = out[0, :, :A]
    resampled = out[1, :, :A]
    log_prob = out[2, :, :1]
    return log_prob, action_mean, resampled, entropy


# std_scale is a traced (non-static) argument: no recompile across PPO schedules.
ppo_actor_forward = jax.jit(_ppo_actor_forward)


def init_params(state_size, h1, h2, h3, action_size, seed=0):
    """Deterministic synthetic parameters mirroring PPO_Actor.__init__/reset_parameters."""
    key = jax.random.PRNGKey(seed)
    ks = jax.random.split(key, 8)

    def linear(kw, kb, fan_in, fan_out, w_lim, b_lim):
        w = jax.random.uniform(kw, (fan_in, fan_out), jnp.float32, -w_lim, w_lim)
        b = jax.random.uniform(kb, (1, fan_out), jnp.float32, -b_lim, b_lim)
        return w, b

    # weights_init_lim uses weight.size()[0] == out_features; biases keep the
    # default PyTorch Linear bound 1/sqrt(in_features).
    w1, c1 = linear(ks[0], ks[1], state_size, h1, 1.0 / math.sqrt(h1), 1.0 / math.sqrt(state_size))
    w2, c2 = linear(ks[2], ks[3], h1, h2, 1.0 / math.sqrt(h2), 1.0 / math.sqrt(h1))
    w3, c3 = linear(ks[4], ks[5], h2, h3, 1.0 / math.sqrt(h3), 1.0 / math.sqrt(h2))
    w4, c4 = linear(ks[6], ks[7], h3, action_size, 0.001, 1.0 / math.sqrt(h3))

    def bn(n):
        return jnp.ones((1, n), jnp.float32), jnp.zeros((1, n), jnp.float32)

    g1, b1 = bn(state_size)
    g2, b2 = bn(h1)
    g3, b3 = bn(h2)
    g4, b4 = bn(h3)

    prelu = jnp.full((1, 1), 0.25, jnp.float32)            # nn.PReLU default weight
    std = jnp.full((1, action_size), 0.15, jnp.float32)    # self.std parameter

    return dict(g1=g1, b1=b1, w1=w1, c1=c1,
                g2=g2, b2=b2, w2=w2, c2=c2,
                g3=g3, b3=b3, w3=w3, c3=c3,
                g4=g4, b4=b4, w4=w4, c4=c4,
                prelu=prelu, std=std)


def ppo_actor_reference(params, s, noise, std_scale=1.0):
    """Pure-JAX reference (matches the PyTorch forward in training mode)."""
    a = params["prelu"][0, 0]

    def bn(x, g, b):
        m = jnp.mean(x, axis=0, keepdims=True)
        v = jnp.mean((x - m) ** 2, axis=0, keepdims=True)
        return (x - m) * jax.lax.rsqrt(v + _EPS) * g + b

    def prelu(x):
        return jnp.where(x > 0, x, a * x)

    x = prelu(bn(s, params["g1"], params["b1"]) @ params["w1"] + params["c1"])
    x = prelu(bn(x, params["g2"], params["b2"]) @ params["w2"] + params["c2"])
    x = prelu(bn(x, params["g3"], params["b3"]) @ params["w3"] + params["c3"])
    mean = jnp.tanh(bn(x, params["g4"], params["b4"]) @ params["w4"] + params["c4"])
    std = jnp.clip(params["std"], 0.05 * std_scale, 0.5 * std_scale)
    act = mean + std * noise
    lp = jnp.sum(-0.5 * noise * noise - jnp.log(std) - _HALF_LOG_2PI, axis=-1, keepdims=True)
    ent = jnp.mean(0.5 + _HALF_LOG_2PI + jnp.log(std)).reshape(1, 1)
    return lp, mean, act, ent


if __name__ == "__main__":
    # Small shapes consistent with the module: state -> h1 -> h2 -> h3 -> action.
    B, S, H1, H2, H3, A = 8, 16, 32, 32, 32, 8

    key = jax.random.PRNGKey(0)
    k_s, k_noise = jax.random.split(key)
    s = jax.random.normal(k_s, (B, S), jnp.float32)
    noise = jax.random.normal(k_noise, (B, A), jnp.float32)   # eps for Normal.sample()

    params = init_params(S, H1, H2, H3, A, seed=0)

    log_prob, action_mean, resampled, entropy = jax.block_until_ready(
        ppo_actor_forward(params, s, noise, 1.0))

    # Shape / sanity checks.
    assert log_prob.shape == (B, 1)
    assert action_mean.shape == (B, A)
    assert resampled.shape == (B, A)
    assert entropy.shape == (1, 1)
    assert bool(jnp.all(jnp.isfinite(log_prob)))
    assert bool(jnp.all(jnp.abs(action_mean) <= 1.0))

    # Numeric check against a pure-JAX reference of the PyTorch forward.
    lp_r, mean_r, act_r, ent_r = ppo_actor_reference(params, s, noise, 1.0)
    assert jnp.allclose(action_mean, mean_r, rtol=1e-4, atol=1e-4)
    assert jnp.allclose(resampled, act_r, rtol=1e-4, atol=1e-4)
    assert jnp.allclose(log_prob, lp_r, rtol=1e-4, atol=1e-4)
    assert jnp.allclose(entropy, ent_r, rtol=1e-4, atol=1e-4)

    print("KERNEL_OK")
</pallas_src>

<mosaic_0001>
module attributes {stable_mosaic.version = 11 : i64} {
  func.func @ppo_actor_kernel(%arg0: memref<8x128xf32, #tpu.memory_space<vmem>>, %arg1: memref<8x128xf32, #tpu.memory_space<vmem>>, %arg2: memref<4x128x128xf32, #tpu.memory_space<vmem>>, %arg3: memref<16x128xf32, #tpu.memory_space<vmem>>, %arg4: memref<3x8x128xf32, #tpu.memory_space<vmem>>) attributes {dimension_semantics = [], scalar_prefetch = 0 : i64, scratch_operands = 0 : i64, tpu.core_type = #tpu.core_type<tc>} {
    %c14 = arith.constant 14 : index
    %c0 = arith.constant 0 : index
    %0 = vector.load %arg3[%c14, %c0] : memref<16x128xf32, #tpu.memory_space<vmem>>, vector<1x128xf32>
    %c0_0 = arith.constant 0 : index
    %c0_1 = arith.constant 0 : index
    %1 = vector.load %arg0[%c0_0, %c0_1] : memref<8x128xf32, #tpu.memory_space<vmem>>, vector<8x128xf32>
    %c0_2 = arith.constant 0 : index
    %c0_3 = arith.constant 0 : index
    %2 = vector.load %arg3[%c0_2, %c0_3] : memref<16x128xf32, #tpu.memory_space<vmem>>, vector<1x128xf32>
    %c1 = arith.constant 1 : index
    %c0_4 = arith.constant 0 : index
    %3 = vector.load %arg3[%c1, %c0_4] : memref<16x128xf32, #tpu.memory_space<vmem>>, vector<1x128xf32>
    %cst = arith.constant dense<0.000000e+00> : vector<128xf32>
    %4 = vector.multi_reduction <add>, %1, %cst [0] : vector<8x128xf32> to vector<128xf32>
    %5 = vector.shape_cast %4 : vector<128xf32> to vector<1x128xf32>
    %cst_5 = arith.constant 8.000000e+00 : f32
    %6 = vector.broadcast %cst_5 : f32 to vector<1x128xf32>
    %7 = arith.divf %5, %6 : vector<1x128xf32>
    %8 = vector.broadcast %7 : vector<1x128xf32> to vector<8x128xf32>
    %9 = arith.subf %1, %8 : vector<8x128xf32>
    %10 = vector.broadcast %7 : vector<1x128xf32> to vector<8x128xf32>
    %11 = arith.subf %1, %10 : vector<8x128xf32>
    %12 = arith.mulf %9, %11 : vector<8x128xf32>
    %cst_6 = arith.constant dense<0.000000e+00> : vector<128xf32>
    %13 = vector.multi_reduction <add>, %12, %cst_6 [0] : vector<8x128xf32> to vector<128xf32>
    %14 = vector.shape_cast %13 : vector<128xf32> to vector<1x128xf32>
    %cst_7 = arith.constant 8.000000e+00 : f32
    %15 = vector.broadcast %cst_7 : f32 to vector<1x128xf32>
    %16 = arith.divf %14, %15 : vector<1x128xf32>
    %17 = vector.broadcast %7 : vector<1x128xf32> to vector<8x128xf32>
    %18 = arith.subf %1, %17 : vector<8x128xf32>
    %cst_8 = arith.constant 9.99999974E-6 : f32
    %19 = vector.broadcast %cst_8 : f32 to vector<1x128xf32>
    %20 = arith.addf %16, %19 : vector<1x128xf32>
    %21 = math.rsqrt %20 : vector<1x128xf32>
    %22 = vector.broadcast %21 : vector<1x128xf32> to vector<8x128xf32>
    %23 = arith.mulf %18, %22 : vector<8x128xf32>
    %24 = vector.broadcast %2 : vector<1x128xf32> to vector<8x128xf32>
    %25 = arith.mulf %23, %24 : vector<8x128xf32>
    %26 = vector.broadcast %3 : vector<1x128xf32> to vector<8x128xf32>
    %27 = arith.addf %25, %26 : vector<8x128xf32>
    %c0_9 = arith.constant 0 : index
    %c0_10 = arith.constant 0 : index
    %c0_11 = arith.constant 0 : index
    %28 = vector.load %arg2[%c0_9, %c0_10, %c0_11] : memref<4x128x128xf32, #tpu.memory_space<vmem>>, vector<1x128x128xf32>
    %29 = vector.shape_cast %28 : vector<1x128x128xf32> to vector<128x128xf32>
    %cst_12 = arith.constant dense<0.000000e+00> : vector<8x128xf32>
    %30 = tpu.matmul %27, %29, %cst_12 {dimension_numbers = #tpu.dot_dimension_numbers<[1], [0], [0], [1], [0, 0, 1, 1], [], []>} : vector<8x128xf32>, vector<128x128xf32>, vector<8x128xf32> -> vector<8x128xf32>
    %c8 = arith.constant 8 : index
    %c0_13 = arith.constant 0 : index
    %31 = vector.load %arg3[%c8, %c0_13] : memref<16x128xf32, #tpu.memory_space<vmem>>, vector<1x128xf32>
    %32 = vector.broadcast %31 : vector<1x128xf32> to vector<8x128xf32>
    %33 = arith.addf %30, %32 : vector<8x128xf32>
    %cst_14 = arith.constant 0.000000e+00 : f32
    %34 = vector.broadcast %cst_14 : f32 to vector<8x128xf32>
    %35 = arith.cmpf ogt, %33, %34 : vector<8x128xf32>
    %36 = vector.broadcast %0 : vector<1x128xf32> to vector<8x128xf32>
    %37 = arith.mulf %36, %33 : vector<8x128xf32>
    %38 = arith.select %35, %33, %37 : vector<8x128xi1>, vector<8x128xf32>
    %c2 = arith.constant 2 : index
    %c0_15 = arith.constant 0 : index
    %39 = vector.load %arg3[%c2, %c0_15] : memref<16x128xf32, #tpu.memory_space<vmem>>, vector<1x128xf32>
    %c3 = arith.constant 3 : index
    %c0_16 = arith.constant 0 : index
    %40 = vector.load %arg3[%c3, %c0_16] : memref<16x128xf32, #tpu.memory_space<vmem>>, vector<1x128xf32>
    %cst_17 = arith.constant dense<0.000000e+00> : vector<128xf32>
    %41 = vector.multi_reduction <add>, %38, %cst_17 [0] : vector<8x128xf32> to vector<128xf32>
    %42 = vector.shape_cast %41 : vector<128xf32> to vector<1x128xf32>
    %cst_18 = arith.constant 8.000000e+00 : f32
    %43 = vector.broadcast %cst_18 : f32 to vector<1x128xf32>
    %44 = arith.divf %42, %43 : vector<1x128xf32>
    %45 = vector.broadcast %44 : vector<1x128xf32> to vector<8x128xf32>
    %46 = arith.subf %38, %45 : vector<8x128xf32>
    %47 = vector.broadcast %44 : vector<1x128xf32> to vector<8x128xf32>
    %48 = arith.subf %38, %47 : vector<8x128xf32>
    %49 = arith.mulf %46, %48 : vector<8x128xf32>
    %cst_19 = arith.constant dense<0.000000e+00> : vector<128xf32>
    %50 = vector.multi_reduction <add>, %49, %cst_19 [0] : vector<8x128xf32> to vector<128xf32>
    %51 = vector.shape_cast %50 : vector<128xf32> to vector<1x128xf32>
    %cst_20 = arith.constant 8.000000e+00 : f32
    %52 = vector.broadcast %cst_20 : f32 to vector<1x128xf32>
    %53 = arith.divf %51, %52 : vector<1x128xf32>
    %54 = vector.broadcast %44 : vector<1x128xf32> to vector<8x128xf32>
    %55 = arith.subf %38, %54 : vector<8x128xf32>
    %cst_21 = arith.constant 9.99999974E-6 : f32
    %56 = vector.broadcast %cst_21 : f32 to vector<1x128xf32>
    %57 = arith.addf %53, %56 : vector<1x128xf32>
    %58 = math.rsqrt %57 : vector<1x128xf32>
    %59 = vector.broadcast %58 : vector<1x128xf32> to vector<8x128xf32>
    %60 = arith.mulf %55, %59 : vector<8x128xf32>
    %61 = vector.broadcast %39 : vector<1x128xf32> to vector<8x128xf32>
    %62 = arith.mulf %60, %61 : vector<8x128xf32>
    %63 = vector.broadcast %40 : vector<1x128xf32> to vector<8x128xf32>
    %64 = arith.addf %62, %63 : vector<8x128xf32>
    %c1_22 = arith.constant 1 : index
    %c0_23 = arith.constant 0 : index
    %c0_24 = arith.constant 0 : index
    %65 = vector.load %arg2[%c1_22, %c0_23, %c0_24] : memref<4x128x128xf32, #tpu.memory_space<vmem>>, vector<1x128x128xf32>
    %66 = vector.shape_cast %65 : vector<1x128x128xf32> to vector<128x128xf32>
    %cst_25 = arith.constant dense<0.000000e+00> : vector<8x128xf32>
    %67 = tpu.matmul %64, %66, %cst_25 {dimension_numbers = #tpu.dot_dimension_numbers<[1], [0], [0], [1], [0, 0, 1, 1], [], []>} : vector<8x128xf32>, vector<128x128xf32>, vector<8x128xf32> -> vector<8x128xf32>
    %c9 = arith.constant 9 : index
    %c0_26 = arith.constant 0 : index
    %68 = vector.load %arg3[%c9, %c0_26] : memref<16x128xf32, #tpu.memory_space<vmem>>, vector<1x128xf32>
    %69 = vector.broadcast %68 : vector<1x128xf32> to vector<8x128xf32>
    %70 = arith.addf %67, %69 : vector<8x128xf32>
    %cst_27 = arith.constant 0.000000e+00 : f32
    %71 = vector.broadcast %cst_27 : f32 to vector<8x128xf32>
    %72 = arith.cmpf ogt, %70, %71 : vector<8x128xf32>
    %73 = vector.broadcast %0 : vector<1x128xf32> to vector<8x128xf32>
    %74 = arith.mulf %73, %70 : vector<8x128xf32>
    %75 = arith.select %72, %70, %74 : vector<8x128xi1>, vector<8x128xf32>
    %c4 = arith.constant 4 : index
    %c0_28 = arith.constant 0 : index
    %76 = vector.load %arg3[%c4, %c0_28] : memref<16x128xf32, #tpu.memory_space<vmem>>, vector<1x128xf32>
    %c5 = arith.constant 5 : index
    %c0_29 = arith.constant 0 : index
    %77 = vector.load %arg3[%c5, %c0_29] : memref<16x128xf32, #tpu.memory_space<vmem>>, vector<1x128xf32>
    %cst_30 = arith.constant dense<0.000000e+00> : vector<128xf32>
    %78 = vector.multi_reduction <add>, %75, %cst_30 [0] : vector<8x128xf32> to vector<128xf32>
    %79 = vector.shape_cast %78 : vector<128xf32> to vector<1x128xf32>
    %cst_31 = arith.constant 8.000000e+00 : f32
    %80 = vector.broadcast %cst_31 : f32 to vector<1x128xf32>
    %81 = arith.divf %79, %80 : vector<1x128xf32>
    %82 = vector.broadcast %81 : vector<1x128xf32> to vector<8x128xf32>
    %83 = arith.subf %75, %82 : vector<8x128xf32>
    %84 = vector.broadcast %81 : vector<1x128xf32> to vector<8x128xf32>
    %85 = arith.subf %75, %84 : vector<8x128xf32>
    %86 = arith.mulf %83, %85 : vector<8x128xf32>
    %cst_32 = arith.constant dense<0.000000e+00> : vector<128xf32>
    %87 = vector.multi_reduction <add>, %86, %cst_32 [0] : vector<8x128xf32> to vector<128xf32>
    %88 = vector.shape_cast %87 : vector<128xf32> to vector<1x128xf32>
    %cst_33 = arith.constant 8.000000e+00 : f32
    %89 = vector.broadcast %cst_33 : f32 to vector<1x128xf32>
    %90 = arith.divf %88, %89 : vector<1x128xf32>
    %91 = vector.broadcast %81 : vector<1x128xf32> to vector<8x128xf32>
    %92 = arith.subf %75, %91 : vector<8x128xf32>
    %cst_34 = arith.constant 9.99999974E-6 : f32
    %93 = vector.broadcast %cst_34 : f32 to vector<1x128xf32>
    %94 = arith.addf %90, %93 : vector<1x128xf32>
    %95 = math.rsqrt %94 : vector<1x128xf32>
    %96 = vector.broadcast %95 : vector<1x128xf32> to vector<8x128xf32>
    %97 = arith.mulf %92, %96 : vector<8x128xf32>
    %98 = vector.broadcast %76 : vector<1x128xf32> to vector<8x128xf32>
    %99 = arith.mulf %97, %98 : vector<8x128xf32>
    %100 = vector.broadcast %77 : vector<1x128xf32> to vector<8x128xf32>
    %101 = arith.addf %99, %100 : vector<8x128xf32>
    %c2_35 = arith.constant 2 : index
    %c0_36 = arith.constant 0 : index
    %c0_37 = arith.constant 0 : index
    %102 = vector.load %arg2[%c2_35, %c0_36, %c0_37] : memref<4x128x128xf32, #tpu.memory_space<vmem>>, vector<1x128x128xf32>
    %103 = vector.shape_cast %102 : vector<1x128x128xf32> to vector<128x128xf32>
    %cst_38 = arith.constant dense<0.000000e+00> : vector<8x128xf32>
    %104 = tpu.matmul %101, %103, %cst_38 {dimension_numbers = #tpu.dot_dimension_numbers<[1], [0], [0], [1], [0, 0, 1, 1], [], []>} : vector<8x128xf32>, vector<128x128xf32>, vector<8x128xf32> -> vector<8x128xf32>
    %c10 = arith.constant 10 : index
    %c0_39 = arith.constant 0 : index
    %105 = vector.load %arg3[%c10, %c0_39] : memref<16x128xf32, #tpu.memory_space<vmem>>, vector<1x128xf32>
    %106 = vector.broadcast %105 : vector<1x128xf32> to vector<8x128xf32>
    %107 = arith.addf %104, %106 : vector<8x128xf32>
    %cst_40 = arith.constant 0.000000e+00 : f32
    %108 = vector.broadcast %cst_40 : f32 to vector<8x128xf32>
    %109 = arith.cmpf ogt, %107, %108 : vector<8x128xf32>
    %110 = vector.broadcast %0 : vector<1x128xf32> to vector<8x128xf32>
    %111 = arith.mulf %110, %107 : vector<8x128xf32>
    %112 = arith.select %109, %107, %111 : vector<8x128xi1>, vector<8x128xf32>
    %c6 = arith.constant 6 : index
    %c0_41 = arith.constant 0 : index
    %113 = vector.load %arg3[%c6, %c0_41] : memref<16x128xf32, #tpu.memory_space<vmem>>, vector<1x128xf32>
    %c7 = arith.constant 7 : index
    %c0_42 = arith.constant 0 : index
    %114 = vector.load %arg3[%c7, %c0_42] : memref<16x128xf32, #tpu.memory_space<vmem>>, vector<1x128xf32>
    %cst_43 = arith.constant dense<0.000000e+00> : vector<128xf32>
    %115 = vector.multi_reduction <add>, %112, %cst_43 [0] : vector<8x128xf32> to vector<128xf32>
    %116 = vector.shape_cast %115 : vector<128xf32> to vector<1x128xf32>
    %cst_44 = arith.constant 8.000000e+00 : f32
    %117 = vector.broadcast %cst_44 : f32 to vector<1x128xf32>
    %118 = arith.divf %116, %117 : vector<1x128xf32>
    %119 = vector.broadcast %118 : vector<1x128xf32> to vector<8x128xf32>
    %120 = arith.subf %112, %119 : vector<8x128xf32>
    %121 = vector.broadcast %118 : vector<1x128xf32> to vector<8x128xf32>
    %122 = arith.subf %112, %121 : vector<8x128xf32>
    %123 = arith.mulf %120, %122 : vector<8x128xf32>
    %cst_45 = arith.constant dense<0.000000e+00> : vector<128xf32>
    %124 = vector.multi_reduction <add>, %123, %cst_45 [0] : vector<8x128xf32> to vector<128xf32>
    %125 = vector.shape_cast %124 : vector<128xf32> to vector<1x128xf32>
    %cst_46 = arith.constant 8.000000e+00 : f32
    %126 = vector.broadcast %cst_46 : f32 to vector<1x128xf32>
    %127 = arith.divf %125, %126 : vector<1x128xf32>
    %128 = vector.broadcast %118 : vector<1x128xf32> to vector<8x128xf32>
    %129 = arith.subf %112, %128 : vector<8x128xf32>
    %cst_47 = arith.constant 9.99999974E-6 : f32
    %130 = vector.broadcast %cst_47 : f32 to vector<1x128xf32>
    %131 = arith.addf %127, %130 : vector<1x128xf32>
    %132 = math.rsqrt %131 : vector<1x128xf32>
    %133 = vector.broadcast %132 : vector<1x128xf32> to vector<8x128xf32>
    %134 = arith.mulf %129, %133 : vector<8x128xf32>
    %135 = vector.broadcast %113 : vector<1x128xf32> to vector<8x128xf32>
    %136 = arith.mulf %134, %135 : vector<8x128xf32>
    %137 = vector.broadcast %114 : vector<1x128xf32> to vector<8x128xf32>
    %138 = arith.addf %136, %137 : vector<8x128xf32>
    %c3_48 = arith.constant 3 : index
    %c0_49 = arith.constant 0 : index
    %c0_50 = arith.constant 0 : index
    %139 = vector.load %arg2[%c3_48, %c0_49, %c0_50] : memref<4x128x128xf32, #tpu.memory_space<vmem>>, vector<1x128x128xf32>
    %140 = vector.shape_cast %139 : vector<1x128x128xf32> to vector<128x128xf32>
    %cst_51 = arith.constant dense<0.000000e+00> : vector<8x128xf32>
    %141 = tpu.matmul %138, %140, %cst_51 {dimension_numbers = #tpu.dot_dimension_numbers<[1], [0], [0], [1], [0, 0, 1, 1], [], []>} : vector<8x128xf32>, vector<128x128xf32>, vector<8x128xf32> -> vector<8x128xf32>
    %c11 = arith.constant 11 : index
    %c0_52 = arith.constant 0 : index
    %142 = vector.load %arg3[%c11, %c0_52] : memref<16x128xf32, #tpu.memory_space<vmem>>, vector<1x128xf32>
    %143 = vector.broadcast %142 : vector<1x128xf32> to vector<8x128xf32>
    %144 = arith.addf %141, %143 : vector<8x128xf32>
    %145 = math.tanh %144 : vector<8x128xf32>
    %c12 = arith.constant 12 : index
    %c0_53 = arith.constant 0 : index
    %146 = vector.load %arg3[%c12, %c0_53] : memref<16x128xf32, #tpu.memory_space<vmem>>, vector<1x128xf32>
    %c0_54 = arith.constant 0 : index
    %c0_55 = arith.constant 0 : index
    %147 = vector.load %arg1[%c0_54, %c0_55] : memref<8x128xf32, #tpu.memory_space<vmem>>, vector<8x128xf32>
    %148 = vector.broadcast %146 : vector<1x128xf32> to vector<8x128xf32>
    %149 = arith.mulf %148, %147 : vector<8x128xf32>
    %150 = arith.addf %145, %149 : vector<8x128xf32>
    %cst_56 = arith.constant -5.000000e-01 : f32
    %151 = vector.broadcast %cst_56 : f32 to vector<8x128xf32>
    %152 = arith.mulf %151, %147 : vector<8x128xf32>
    %153 = arith.mulf %152, %147 : vector<8x128xf32>
    %c13 = arith.constant 13 : index
    %c0_57 = arith.constant 0 : index
    %154 = vector.load %arg3[%c13, %c0_57] : memref<16x128xf32, #tpu.memory_space<vmem>>, vector<1x128xf32>
    %155 = vector.broadcast %154 : vector<1x128xf32> to vector<8x128xf32>
    %156 = arith.addf %153, %155 : vector<8x128xf32>
    %cst_58 = arith.constant dense<0.000000e+00> : vector<8xf32>
    %157 = vector.multi_reduction <add>, %156, %cst_58 [1] : vector<8x128xf32> to vector<8xf32>
    %158 = vector.shape_cast %157 : vector<8xf32> to vector<8x1xf32>
    %c0_59 = arith.constant 0 : index
    %c0_60 = arith.constant 0 : index
    %c0_61 = arith.constant 0 : index
    %159 = vector.load %arg4[%c0_59, %c0_60, %c0_61] : memref<3x8x128xf32, #tpu.memory_space<vmem>>, vector<1x8x128xf32>
    %160 = vector.shape_cast %159 : vector<1x8x128xf32> to vector<8x128xf32>
    %161 = vector.shape_cast %145 : vector<8x128xf32> to vector<1x8x128xf32>
    tpu.vector_store %arg4[%c0_59, %c0_60, %c0_61], %161 {strides = array<i32>} : memref<3x8x128xf32, #tpu.memory_space<vmem>>, vector<1x8x128xf32>,
    %c1_62 = arith.constant 1 : index
    %c0_63 = arith.constant 0 : index
    %c0_64 = arith.constant 0 : index
    %162 = vector.load %arg4[%c1_62, %c0_63, %c0_64] : memref<3x8x128xf32, #tpu.memory_space<vmem>>, vector<1x8x128xf32>
    %163 = vector.shape_cast %162 : vector<1x8x128xf32> to vector<8x128xf32>
    %164 = vector.shape_cast %150 : vector<8x128xf32> to vector<1x8x128xf32>
    tpu.vector_store %arg4[%c1_62, %c0_63, %c0_64], %164 {strides = array<i32>} : memref<3x8x128xf32, #tpu.memory_space<vmem>>, vector<1x8x128xf32>,
    %165 = vector.shape_cast %158 : vector<8x1xf32> to vector<8x1xf32>
    %166 = vector.broadcast %165 : vector<8x1xf32> to vector<8x128xf32>
    %c2_65 = arith.constant 2 : index
    %c0_66 = arith.constant 0 : index
    %c0_67 = arith.constant 0 : index
    %167 = vector.load %arg4[%c2_65, %c0_66, %c0_67] : memref<3x8x128xf32, #tpu.memory_space<vmem>>, vector<1x8x128xf32>
    %168 = vector.shape_cast %167 : vector<1x8x128xf32> to vector<8x128xf32>
    %169 = vector.shape_cast %166 : vector<8x128xf32> to vector<1x8x128xf32>
    tpu.vector_store %arg4[%c2_65, %c0_66, %c0_67], %169 {strides = array<i32>} : memref<3x8x128xf32, #tpu.memory_space<vmem>>, vector<1x8x128xf32>,
    return
  }
}

</mosaic_0001>

<bundles_post_ra>
// kernel: _ppo_actor_forward.1
= control target key start
LH: loop header
LB: loop body
LE: loop exit
PB: predicated region body
PF: predicated region fallthrough
CT: control target
= control target key end

     0   :  { %v934_v0 = vmov 0.0|0.0   ;;  %vm935_vm0 = vmmov 0   ;;  %v936_v4 = vmov 0.0   ;;  %s1259_s2 = inlined_call_operand.vmem [shape: f32[4,128,128], index: 2, kind: input, shape index: {}]   ;;  %s1260_s0 = inlined_call_operand.vmem [shape: f32[8,128], index: 0, kind: input, shape index: {}]   ;;  %s1261_s3 = inlined_call_operand.vmem [shape: f32[16,128], index: 3, kind: input, shape index: {}]   ;;  %s1262_s1 = inlined_call_operand.vmem [shape: f32[8,128], index: 1, kind: input, shape index: {}]   ;;  %s1263_s4 = inlined_call_operand.vmem [shape: f32[3,8,128], index: 4, kind: output, shape index: {}]  }
   0x1   :  { %825 = vmatprep.subr.bf16.mxu0 %v934_v0  ;;  %v51_v1 = vld [vmem:[%s1259_s2] sm:$0xff]  ;;  %v52_v2 = vld [vmem:[%s1259_s2 + $0x8] sm:$0xff]  ;;  %v53_v3 = vld [vmem:[%s1259_s2 + $0x10] sm:$0xff]  ;;  %717 = vmatprep.mubr.msk.f32.mxu0 %vm935_vm0, %v936_v4 }
   0x2   :  { %v826_v5 = vpack.c.bf16 %v52_v2, %v51_v1  ;;  %v54_v6 = vld [vmem:[%s1259_s2 + $0x18] sm:$0xff]  ;;  %849 = vmatprep.subr.bf16.mxu1 %v934_v0  ;;  %752 = vmatprep.mubr.msk.f32.mxu1 %vm935_vm0, %v936_v4  ;;  %v55_v8 = vld [vmem:[%s1259_s2 + $0x20] sm:$0xff]  ;;  %v56_v9 = vld [vmem:[%s1259_s2 + $0x28] sm:$0xff] }
   0x3   :  { %v829_v7 = vpack.c.bf16 %v54_v6, %v53_v3  ;;  %v18_v10 = vld [vmem:[%s1260_s0] sm:$0xff]  ;;  %v832_v12 = vpack.c.bf16 %v56_v9, %v55_v8  ;;  %v57_v13 = vld [vmem:[%s1259_s2 + $0x30] sm:$0xff]  ;;  %v58_v14 = vld [vmem:[%s1259_s2 + $0x38] sm:$0xff] }
   0x4   :  { %827 = vmatpush3.bf16.msra.mxu0 %v826_v5  ;;  %v21_v11 = vrot.slane %v18_v10, 4  ;;  %v835_v17 = vpack.c.bf16 %v58_v14, %v57_v13  ;;  %v59_v18 = vld [vmem:[%s1259_s2 + $0x40] sm:$0xff]  ;;  %v60_v19 = vld [vmem:[%s1259_s2 + $0x48] sm:$0xff]  ;;  %v61_v23 = vld [vmem:[%s1259_s2 + $0x50] sm:$0xff] }
   0x5   :  { %828 = vmatprep.subr.bf16.mxu0 %v934_v0  ;;  %v838_v22 = vpack.c.bf16 %v60_v19, %v59_v18  ;;  %v62_v24 = vld [vmem:[%s1259_s2 + $0x58] sm:$0xff]  ;;  %v63_v28 = vld [vmem:[%s1259_s2 + $0x60] sm:$0xff]  ;;  %v64_v29 = vld [vmem:[%s1259_s2 + $0x68] sm:$0xff] }
   0x6   :  { %v22_v15 = vadd.f32 %v21_v11, %v18_v10  ;;  %v841_v27 = vpack.c.bf16 %v62_v24, %v61_v23  ;;  %v844_v32 = vpack.c.bf16 %v64_v29, %v63_v28  ;;  %v65_v33 = vld [vmem:[%s1259_s2 + $0x70] sm:$0xff]  ;;  %v66_v34 = vld [vmem:[%s1259_s2 + $0x78] sm:$0xff]  ;;  %v552_v45 = vld [vmem:[%s1261_s3] ss:$0 sm:$0xff] }
   0x7   :  { %v847_v37 = vpack.c.bf16 %v66_v34, %v65_v33  ;;  %v553_v47 = vld [vmem:[%s1261_s3 + $0x1] ss:$0 sm:$0xff]  ;;  %v559_v51 = vld [vmem:[%s1259_s2 + $0x88] sm:$0xff]  ;;  %v560_v53 = vld [vmem:[%s1259_s2 + $0x90] sm:$0xff] }
   0x8   :  { %830 = vmatpush3.bf16.msra.mxu0 %v829_v7  ;;  %v23_v16 = vrot.slane %v22_v15, 2  ;;  %v558_v50 = vld [vmem:[%s1259_s2 + $0x80] sm:$0xff]  ;;  %v561_v54 = vld [vmem:[%s1259_s2 + $0x98] sm:$0xff]  ;;  %v563_v57 = vld [vmem:[%s1259_s2 + $0xa8] sm:$0xff] }
   0x9   :  { %831 = vmatprep.subr.bf16.mxu0 %v934_v0  ;;  %v850_v52 = vpack.c.bf16 %v559_v51, %v558_v50  ;;  %v853_v55 = vpack.c.bf16 %v561_v54, %v560_v53  ;;  %v562_v56 = vld [vmem:[%s1259_s2 + $0xa0] sm:$0xff]  ;;  %v564_v59 = vld [vmem:[%s1259_s2 + $0xb0] sm:$0xff]  ;;  %v565_v60 = vld [vmem:[%s1259_s2 + $0xb8] sm:$0xff] }
   0xa   :  { %v24_v20 = vadd.f32 %v23_v16, %v22_v15  ;;  %v856_v58 = vpack.c.bf16 %v563_v57, %v562_v56  ;;  %v859_v61 = vpack.c.bf16 %v565_v60, %v564_v59  ;;  %v566_v62 = vld [vmem:[%s1259_s2 + $0xc0] sm:$0xff]  ;;  %v567_v63 = vld [vmem:[%s1259_s2 + $0xc8] sm:$0xff]  ;;  %v568_v2 = vld [vmem:[%s1259_s2 + $0xd0] sm:$0xff] }
   0xb   :  { %851 = vmatpush3.bf16.msra.mxu1 %v850_v52  ;;  %v862_v1 = vpack.c.bf16 %v567_v63, %v566_v62  ;;  %v569_v3 = vld [vmem:[%s1259_s2 + $0xd8] sm:$0xff]  ;;  %v570_v6 = vld [vmem:[%s1259_s2 + $0xe0] sm:$0xff]  ;;  %v571_v7 = vld [vmem:[%s1259_s2 + $0xe8] sm:$0xff] }
   0xc   :  { %833 = vmatpush3.bf16.msra.mxu0 %v832_v12  ;;  %v25_v21 = vrot.slane %v24_v20, 1  ;;  %852 = vmatprep.subr.bf16.mxu1 %v934_v0  ;;  %v865_v5 = vpack.c.bf16 %v569_v3, %v568_v2  ;;  %v868_v8 = vpack.c.bf16 %v571_v7, %v570_v6  ;;  %v572_v9 = vld [vmem:[%s1259_s2 + $0xf0] sm:$0xff]  ;;  %v554_v12 = vld [vmem:[%s1261_s3 + $0x8] ss:$0 sm:$0xff]  ;;  %v1097_v13 = vld [vmem:[%s1261_s3 + $0xe] ss:$0 sm:$0xff] }
   0xd   :  { %834 = vmatprep.subr.bf16.mxu0 %v934_v0  ;;  %v583_v50 = vld [vmem:[%s1259_s2 + $0x130] sm:$0xff]  ;;  %v584_v51 = vld [vmem:[%s1259_s2 + $0x138] sm:$0xff]  ;;  %v585_v53 = vld [vmem:[%s1259_s2 + $0x140] sm:$0xff] }
   0xe   :  { %v26_v25 = vadd.f32 %v25_v21, %v24_v20  ;;  %v883_v52 = vpack.c.bf16 %v584_v51, %v583_v50  ;;  %v586_v54 = vld [vmem:[%s1259_s2 + $0x148] sm:$0xff]  ;;  %v587_v56 = vld [vmem:[%s1259_s2 + $0x150] sm:$0xff]  ;;  %v588_v57 = vld [vmem:[%s1259_s2 + $0x158] sm:$0xff] }
   0xf   :  { %854 = vmatpush3.bf16.msra.mxu1 %v853_v55  ;;  %v886_v55 = vpack.c.bf16 %v586_v54, %v585_v53  ;;  %v589_v59 = vld [vmem:[%s1259_s2 + $0x160] sm:$0xff]  ;;  %v590_v60 = vld [vmem:[%s1259_s2 + $0x168] sm:$0xff]  ;;  %v591_v62 = vld [vmem:[%s1259_s2 + $0x170] sm:$0xff] }
  0x10   :  { %836 = vmatpush3.bf16.msra.mxu0 %v835_v17  ;;  %v28_v26 = vmul.f32 0.125, %v26_v25  ;;  %855 = vmatprep.subr.bf16.mxu1 %v934_v0  ;;  %v592_v63 = vld [vmem:[%s1259_s2 + $0x178] sm:$0xff]  ;;  %v574_v2 = vld [vmem:[%s1261_s3 + $0x9] ss:$0 sm:$0xff]  ;;  %v608_v50 = vld [vmem:[%s1259_s2 + $0x1e0] sm:$0xff] }
  0x11   :  { %837 = vmatprep.subr.bf16.mxu0 %v934_v0  ;;  %v609_v51 = vld [vmem:[%s1259_s2 + $0x1e8] sm:$0xff]  ;;  %v610_v53 = vld [vmem:[%s1259_s2 + $0x1f0] sm:$0xff]  ;;  %v611_v54 = vld [vmem:[%s1259_s2 + $0x1f8] sm:$0xff] }
  0x12   :  { %v29_v30 = vsub.f32 %v18_v10, %v28_v26  ;;  %v573_v10 = vld [vmem:[%s1259_s2 + $0xf8] sm:$0xff] }
  0x13   :  { %857 = vmatpush3.bf16.msra.mxu1 %v856_v58  ;;  %v871_v11 = vpack.c.bf16 %v573_v10, %v572_v9  ;;  %v889_v58 = vpack.c.bf16 %v588_v57, %v587_v56  ;;  %v526_v56 = vld [vmem:[%s1262_s1] sm:$0xff] }
  0x14   :  { %839 = vmatpush3.bf16.msra.mxu0 %v838_v22  ;;  %v30_v31 = vmul.f32 %v29_v30, %v29_v30  ;;  %858 = vmatprep.subr.bf16.mxu1 %v934_v0  ;;  %v533_v57 = vmul.f32 -0.5, %v526_v56 }
  0x15   :  { %840 = vmatprep.subr.bf16.mxu0 %v934_v0 }
  0x16   :  { %v31_v35 = vrot.slane %v30_v31, 4 }
  0x17   :  { %860 = vmatpush3.bf16.msra.mxu1 %v859_v61  ;;  %v892_v61 = vpack.c.bf16 %v590_v60, %v589_v59  ;;  %v593_v60 = vld [vmem:[%s1261_s3 + $0xa] ss:$0 sm:$0xff] }
  0x18   :  { %842 = vmatpush3.bf16.msra.mxu0 %v841_v27  ;;  %v32_v36 = vadd.f32 %v31_v35, %v30_v31  ;;  %861 = vmatprep.subr.bf16.mxu1 %v934_v0 }
  0x19   :  { %843 = vmatprep.subr.bf16.mxu0 %v934_v0 }
  0x1a   :  { %v33_v38 = vrot.slane %v32_v36, 2 }
  0x1b   :  { %863 = vmatpush3.bf16.msra.mxu1 %v862_v1  ;;  %v895_v1 = vpack.c.bf16 %v592_v63, %v591_v62 }
  0x1c   :  { %845 = vmatpush3.bf16.msra.mxu0 %v844_v32  ;;  %v34_v39 = vadd.f32 %v33_v38, %v32_v36  ;;  %864 = vmatprep.subr.bf16.mxu1 %v934_v0 }
  0x1d   :  { %846 = vmatprep.subr.bf16.mxu0 %v934_v0 }
  0x1e   :  { %v35_v40 = vrot.slane %v34_v39, 1 }
  0x1f   :  { %866 = vmatpush3.bf16.msra.mxu1 %v865_v5 }
  0x20   :  { %848 = vmatpush3.bf16.msra.mxu0 %v847_v37  ;;  %v36_v41 = vadd.f32 %v35_v40, %v34_v39  ;;  %867 = vmatprep.subr.bf16.mxu1 %v934_v0  ;;  %v556_v37 = vld [vmem:[%s1261_s3 + $0x2] ss:$0 sm:$0xff]  ;;  %v557_v39 = vld [vmem:[%s1261_s3 + $0x3] ss:$0 sm:$0xff] }
  0x21   :  { %873 = vmatprep.subr.bf16.mxu0 %v934_v0 }
  0x22   :  { %v37_v42 = vmul.f32 0.125, %v36_v41 }
  0x23   :  { %869 = vmatpush3.bf16.msra.mxu1 %v868_v8 }
  0x24   :  { %v38_v43 = vadd.f32 1e-05, %v37_v42  ;;  %870 = vmatprep.subr.bf16.mxu1 %v934_v0  ;;  %v577_v42 = vld [vmem:[%s1259_s2 + $0x100] sm:$0xff] }
  0x26   :  { %924 = vrsqrt.f32 %v38_v43  ;;  %v578_v43 = vld [vmem:[%s1259_s2 + $0x108] sm:$0xff] }
  0x27   :  { %872 = vmatpush3.bf16.msra.mxu1 %v871_v11 }
  0x28   :  { %897 = vmatprep.subr.bf16.mxu1 %v934_v0 }
  0x30   :  { %v925_v44 = vpop.eup %924 }
  0x31   :  { %v40_v46 = vmul.f32 %v925_v44, %v29_v30  ;;  %v874_v44 = vpack.c.bf16 %v578_v43, %v577_v42  ;;  %v602_v42 = vld [vmem:[%s1259_s2 + $0x1b0] sm:$0xff]  ;;  %v603_v43 = vld [vmem:[%s1259_s2 + $0x1b8] sm:$0xff] }
  0x33   :  { %v45_v48 = vmul.f32 %v552_v45, %v40_v46  ;;  %v579_v45 = vld [vmem:[%s1259_s2 + $0x110] sm:$0xff] }
  0x35   :  { %v50_v49 = vadd.f32 %v553_v47, %v45_v48  ;;  %v581_v47 = vld [vmem:[%s1259_s2 + $0x120] sm:$0xff]  ;;  %v582_v48 = vld [vmem:[%s1259_s2 + $0x128] sm:$0xff] }
  0x37   :  { %718 = vmatmul.mubr.f32.vlgmr.msra.gmra.mrb[0].mxu0 %v50_v49  ;;  %v880_v49 = vpack.c.bf16 %v582_v48, %v581_v47  ;;  %v606_v47 = vld [vmem:[%s1259_s2 + $0x1d0] sm:$0xff]  ;;  %v607_v48 = vld [vmem:[%s1259_s2 + $0x1d8] sm:$0xff] }
  0x38   :  { %787 = vmatprep.mubr.msk.f32.mxu0 %vm935_vm0, %v936_v4  ;;  %875 = vmatpush3.bf16.msra.mxu0 %v874_v44  ;;  %v907_v44 = vpack.c.bf16 %v603_v43, %v602_v42 }
  0x39   :  { %876 = vmatprep.subr.bf16.mxu0 %v934_v0 }
 0x10a   :  { %v138_v14 = vpop.f32.mrb[0].mxu0 }
 0x10b   :  { %v139_v15 = vadd.f32 %v554_v12, %v138_v14  ;;  %v719_v16 = vpop.f32.mrb[1].mxu0 }
 0x10d   :  { %vm142_vm1 = vcmp.gt.f32.partialorder %v139_v15, 0.0  ;;  %v147_v17 = vmul.f32 %v1097_v13, %v139_v15 }
 0x10f   :  { %v148_v18 = vsel %vm142_vm1, %v139_v15, %v147_v17 }
 0x110   :  { %v151_v19 = vrot.slane %v148_v18, 4 }
 0x112   :  { %v152_v20 = vadd.f32 %v151_v19, %v148_v18 }
 0x114   :  { %v153_v21 = vrot.slane %v152_v20, 2 }
 0x116   :  { %v154_v22 = vadd.f32 %v153_v21, %v152_v20 }
 0x118   :  { %v155_v23 = vrot.slane %v154_v22, 1 }
 0x11a   :  { %v156_v24 = vadd.f32 %v155_v23, %v154_v22 }
 0x11c   :  { %v157_v25 = vmul.f32 0.125, %v156_v24 }
 0x11e   :  { %v158_v26 = vsub.f32 %v148_v18, %v157_v25 }
 0x120   :  { %v159_v27 = vmul.f32 %v158_v26, %v158_v26 }
 0x122   :  { %v160_v28 = vrot.slane %v159_v27, 4 }
 0x124   :  { %v161_v29 = vadd.f32 %v160_v28, %v159_v27  ;;  %v575_v28 = vld [vmem:[%s1261_s3 + $0x4] ss:$0 sm:$0xff] }
 0x126   :  { %v162_v30 = vrot.slane %v161_v29, 2 }
 0x128   :  { %v163_v31 = vadd.f32 %v162_v30, %v161_v29  ;;  %v576_v30 = vld [vmem:[%s1261_s3 + $0x5] ss:$0 sm:$0xff] }
 0x12a   :  { %v164_v32 = vrot.slane %v163_v31, 1 }
 0x12c   :  { %v165_v33 = vadd.f32 %v164_v32, %v163_v31 }
 0x12e   :  { %v166_v34 = vmul.f32 0.125, %v165_v33  ;;  %v596_v33 = vld [vmem:[%s1259_s2 + $0x180] sm:$0xff] }
 0x130   :  { %v167_v35 = vadd.f32 1e-05, %v166_v34  ;;  %v597_v34 = vld [vmem:[%s1259_s2 + $0x188] sm:$0xff] }
 0x132   :  { %926 = vrsqrt.f32 %v167_v35  ;;  %v898_v35 = vpack.c.bf16 %v597_v34, %v596_v33 }
 0x13c   :  { %v927_v36 = vpop.eup %926 }
 0x13d   :  { %v169_v38 = vmul.f32 %v927_v36, %v158_v26  ;;  %v598_v36 = vld [vmem:[%s1259_s2 + $0x190] sm:$0xff] }
 0x13f   :  { %v174_v40 = vmul.f32 %v556_v37, %v169_v38  ;;  %v599_v37 = vld [vmem:[%s1259_s2 + $0x198] sm:$0xff] }
 0x140   :  { %v901_v38 = vpack.c.bf16 %v599_v37, %v598_v36 }
 0x141   :  { %v179_v41 = vadd.f32 %v557_v39, %v174_v40  ;;  %v600_v39 = vld [vmem:[%s1259_s2 + $0x1a0] sm:$0xff]  ;;  %v601_v40 = vld [vmem:[%s1259_s2 + $0x1a8] sm:$0xff] }
 0x143   :  { %753 = vmatmul.mubr.f32.vlgmr.msra.gmra.mrb[0].mxu1 %v179_v41  ;;  %v904_v41 = vpack.c.bf16 %v601_v40, %v600_v39 }
 0x144   :  { %822 = vmatprep.mubr.msk.f32.mxu1 %vm935_vm0, %v936_v4  ;;  %v580_v4 = vld [vmem:[%s1259_s2 + $0x118] sm:$0xff]  ;;  %899 = vmatpush3.bf16.msra.mxu1 %v898_v35 }
 0x145   :  { %v877_v46 = vpack.c.bf16 %v580_v4, %v579_v45  ;;  %900 = vmatprep.subr.bf16.mxu1 %v934_v0  ;;  %v604_v45 = vld [vmem:[%s1259_s2 + $0x1c0] sm:$0xff]  ;;  %v605_v4 = vld [vmem:[%s1259_s2 + $0x1c8] sm:$0xff] }
 0x147   :  { %878 = vmatpush3.bf16.msra.mxu0 %v877_v46  ;;  %v910_v46 = vpack.c.bf16 %v605_v4, %v604_v45 }
 0x148   :  { %879 = vmatprep.subr.bf16.mxu0 %v934_v0  ;;  %902 = vmatpush3.bf16.msra.mxu1 %v901_v38 }
 0x149   :  { %903 = vmatprep.subr.bf16.mxu1 %v934_v0 }
 0x14b   :  { %881 = vmatpush3.bf16.msra.mxu0 %v880_v49  ;;  %v913_v49 = vpack.c.bf16 %v607_v48, %v606_v47 }
 0x14c   :  { %882 = vmatprep.subr.bf16.mxu0 %v934_v0  ;;  %905 = vmatpush3.bf16.msra.mxu1 %v904_v41 }
 0x14d   :  { %906 = vmatprep.subr.bf16.mxu1 %v934_v0 }
 0x14f   :  { %884 = vmatpush3.bf16.msra.mxu0 %v883_v52  ;;  %v916_v52 = vpack.c.bf16 %v609_v51, %v608_v50 }
 0x150   :  { %885 = vmatprep.subr.bf16.mxu0 %v934_v0  ;;  %908 = vmatpush3.bf16.msra.mxu1 %v907_v44 }
 0x151   :  { %909 = vmatprep.subr.bf16.mxu1 %v934_v0 }
 0x153   :  { %887 = vmatpush3.bf16.msra.mxu0 %v886_v55  ;;  %v919_v55 = vpack.c.bf16 %v611_v54, %v610_v53 }
 0x154   :  { %888 = vmatprep.subr.bf16.mxu0 %v934_v0  ;;  %911 = vmatpush3.bf16.msra.mxu1 %v910_v46 }
 0x155   :  { %912 = vmatprep.subr.bf16.mxu1 %v934_v0 }
 0x157   :  { %890 = vmatpush3.bf16.msra.mxu0 %v889_v58  ;;  %v614_v58 = vld [vmem:[%s1261_s3 + $0xd] ss:$0 sm:$0xff] }
 0x158   :  { %891 = vmatprep.subr.bf16.mxu0 %v934_v0  ;;  %914 = vmatpush3.bf16.msra.mxu1 %v913_v49 }
 0x159   :  { %915 = vmatprep.subr.bf16.mxu1 %v934_v0 }
 0x15b   :  { %893 = vmatpush3.bf16.msra.mxu0 %v892_v61 }
 0x15c   :  { %894 = vmatprep.subr.bf16.mxu0 %v934_v0  ;;  %917 = vmatpush3.bf16.msra.mxu1 %v916_v52 }
 0x15d   :  { %918 = vmatprep.subr.bf16.mxu1 %v934_v0  ;;  %v534_v0 = vmul.f32 %v533_v57, %v526_v56 }
 0x15f   :  { %896 = vmatpush3.bf16.msra.mxu0 %v895_v1  ;;  %v540_v59 = vadd.f32 %v614_v58, %v534_v0 }
 0x160   :  { %920 = vmatpush3.bf16.msra.mxu1 %v919_v55 }
 0x161   :  { %541 = vadd.xlane.f32.xlu0 %v540_v59 }
 0x216   :  { %v268_v3 = vpop.f32.mrb[0].mxu1 }
 0x217   :  { %v269_v5 = vadd.f32 %v574_v2, %v268_v3  ;;  %v754_v6 = vpop.f32.mrb[1].mxu1 }
 0x219   :  { %vm272_vm2 = vcmp.gt.f32.partialorder %v269_v5, 0.0  ;;  %v273_v7 = vmul.f32 %v1097_v13, %v269_v5 }
 0x21b   :  { %v274_v8 = vsel %vm272_vm2, %v269_v5, %v273_v7 }
 0x21c   :  { %v277_v9 = vrot.slane %v274_v8, 4 }
 0x21e   :  { %v278_v10 = vadd.f32 %v277_v9, %v274_v8 }
 0x220   :  { %v279_v11 = vrot.slane %v278_v10, 2 }
 0x222   :  { %v280_v12 = vadd.f32 %v279_v11, %v278_v10 }
 0x224   :  { %v281_v14 = vrot.slane %v280_v12, 1 }
 0x226   :  { %v282_v15 = vadd.f32 %v281_v14, %v280_v12 }
 0x228   :  { %v283_v16 = vmul.f32 0.125, %v282_v15 }
 0x22a   :  { %v284_v17 = vsub.f32 %v274_v8, %v283_v16 }
 0x22c   :  { %v285_v18 = vmul.f32 %v284_v17, %v284_v17 }
 0x22e   :  { %v286_v19 = vrot.slane %v285_v18, 4 }
 0x230   :  { %v287_v20 = vadd.f32 %v286_v19, %v285_v18 }
 0x232   :  { %v288_v21 = vrot.slane %v287_v20, 2 }
 0x234   :  { %v289_v22 = vadd.f32 %v288_v21, %v287_v20 }
 0x236   :  { %v290_v23 = vrot.slane %v289_v22, 1 }
 0x238   :  { %v291_v24 = vadd.f32 %v290_v23, %v289_v22  ;;  %v594_v22 = vld [vmem:[%s1261_s3 + $0x6] ss:$0 sm:$0xff] }
 0x23a   :  { %v292_v25 = vmul.f32 0.125, %v291_v24  ;;  %v595_v24 = vld [vmem:[%s1261_s3 + $0x7] ss:$0 sm:$0xff] }
 0x23c   :  { %v293_v26 = vadd.f32 1e-05, %v292_v25 }
 0x23e   :  { %928 = vrsqrt.f32 %v293_v26 }
 0x248   :  { %v929_v27 = vpop.eup %928 }
 0x249   :  { %v295_v29 = vmul.f32 %v929_v27, %v284_v17  ;;  %v542_v27 = vpop.xlane.xlu0 %541 }
 0x24a   :  { %616 = vst [vmem:[%s1263_s4 + $0x10] sm:$0xff] %v542_v27 }
 0x24b   :  { %v300_v31 = vmul.f32 %v575_v28, %v295_v29  ;;  %v612_v28 = vld [vmem:[%s1261_s3 + $0xb] ss:$0 sm:$0xff] }
 0x24d   :  { %v305_v32 = vadd.f32 %v576_v30, %v300_v31 }
 0x24f   :  { %788 = vmatmul.mubr.f32.vlgmr.msra.gmra.mrb[2].mxu0 %v305_v32  ;;  %v613_v32 = vld [vmem:[%s1261_s3 + $0xc] ss:$0 sm:$0xff] }
 0x250   :  { %v531_v33 = vmul.f32 %v613_v32, %v526_v56 }
 0x322   :  { %v394_v61 = vpop.f32.mrb[2].mxu0 }
 0x323   :  { %v395_v62 = vadd.f32 %v593_v60, %v394_v61  ;;  %v789_v63 = vpop.f32.mrb[3].mxu0 }
 0x325   :  { %vm398_vm3 = vcmp.gt.f32.partialorder %v395_v62, 0.0  ;;  %v399_v1 = vmul.f32 %v1097_v13, %v395_v62 }
 0x327   :  { %v400_v2 = vsel %vm398_vm3, %v395_v62, %v399_v1 }
 0x328   :  { %v403_v3 = vrot.slane %v400_v2, 4 }
 0x32a   :  { %v404_v5 = vadd.f32 %v403_v3, %v400_v2 }
 0x32c   :  { %v405_v6 = vrot.slane %v404_v5, 2 }
 0x32e   :  { %v406_v7 = vadd.f32 %v405_v6, %v404_v5 }
 0x330   :  { %v407_v8 = vrot.slane %v406_v7, 1 }
 0x332   :  { %v408_v9 = vadd.f32 %v407_v8, %v406_v7 }
 0x334   :  { %v409_v10 = vmul.f32 0.125, %v408_v9 }
 0x336   :  { %v410_v11 = vsub.f32 %v400_v2, %v409_v10 }
 0x338   :  { %v411_v12 = vmul.f32 %v410_v11, %v410_v11 }
 0x33a   :  { %v412_v14 = vrot.slane %v411_v12, 4 }
 0x33c   :  { %v413_v15 = vadd.f32 %v412_v14, %v411_v12 }
 0x33e   :  { %v414_v16 = vrot.slane %v413_v15, 2 }
 0x340   :  { %v415_v17 = vadd.f32 %v414_v16, %v413_v15 }
 0x342   :  { %v416_v18 = vrot.slane %v415_v17, 1 }
 0x344   :  { %v417_v19 = vadd.f32 %v416_v18, %v415_v17 }
 0x346   :  { %v418_v20 = vmul.f32 0.125, %v417_v19 }
 0x348   :  { %v419_v21 = vadd.f32 1e-05, %v418_v20 }
 0x34a   :  { %930 = vrsqrt.f32 %v419_v21 }
 0x354   :  { %v931_v13 = vpop.eup %930 }
 0x355   :  { %v421_v23 = vmul.f32 %v931_v13, %v410_v11 }
 0x357   :  { %v426_v25 = vmul.f32 %v594_v22, %v421_v23 }
 0x359   :  { %v431_v26 = vadd.f32 %v595_v24, %v426_v25 }
 0x35b   :  { %823 = vmatmul.mubr.f32.vlgmr.msra.gmra.mrb[2].mxu1 %v431_v26 }
 0x42e   :  { %v520_v29 = vpop.f32.mrb[2].mxu1 }
 0x42f   :  { %v521_v30 = vadd.f32 %v612_v28, %v520_v29  ;;  %v824_v31 = vpop.f32.mrb[3].mxu1 }
 0x431   :  { %932 = vtanh.f32 %v521_v30 }
 0x43b   :  { %v933_v34 = vpop.eup %932 }
 0x43c   :  { %v532_v35 = vadd.f32 %v933_v34, %v531_v33  ;;  %543 = vst [vmem:[%s1263_s4] sm:$0xff] %v933_v34 }
 0x43e   :  { %615 = vst [vmem:[%s1263_s4 + $0x8] sm:$0xff] %v532_v35 }

</bundles_post_ra>
